<compile_context>
chip_gen: v7x
topology: tpu7x:2x2x1
jax: 0.10.0
libtpu: 0.0.40
codegen_flags: <defaults>
</compile_context>

<pallas_src>
import math

import jax
import jax.numpy as jnp
from jax.experimental import pallas as pl
from jax.experimental.pallas import tpu as pltpu


def classifier_kernel(x_ref, w1_ref, b1_ref, w2_ref, b2_ref, o_ref):
    """Fused MLP forward on a (F, TILE_B) batch tile.

    x_ref  : (F, TILE_B)  compute dtype (bf16 or f32)
    w1_ref : (H, F)       compute dtype
    b1_ref : (H, 1)       f32
    w2_ref : (H, 1)       f32
    b2_ref : (1, 1)       f32
    o_ref  : (1, TILE_B)  f32
    """
    x = x_ref[...]                                                   # (F, Tb)
    w1 = w1_ref[...]                                                 # (H, F)
    # Layer 1 on the MXU, f32 accumulation; N = TILE_B lanes are fully used.
    h = jnp.dot(w1, x, preferred_element_type=jnp.float32)           # (H, Tb)
    h = h + b1_ref[...]                                              # bias over lanes
    h = jnp.maximum(h, 0.0)                                          # ReLU (VPU)
    # Layer 2: K=10 -> N=1 is wasteful on the MXU; do VPU mul + sublane reduce.
    z = jnp.sum(h * w2_ref[...], axis=0, keepdims=True) + b2_ref[...]  # (1, Tb)
    o_ref[...] = jax.nn.sigmoid(z)                                   # EUP


def _round_up(n, m):
    return ((n + m - 1) // m) * m


def classifier_forward(x, w1, b1, w2, b2, *, tile_b=None,
                       compute_dtype=jnp.bfloat16):
    """x: (B, F) f32; w1: (F, H); b1: (H,)/(1,H); w2: (H, 1); b2: (1,)/(1,1).
    Returns (B, 1) f32 = sigmoid(relu(x @ w1 + b1) @ w2 + b2)."""
    B, F = x.shape
    H = w1.shape[1]   # 10

    itemsize = jnp.dtype(compute_dtype).itemsize
    if tile_b is None:
        # F-aware tile: keep 2 double-buffered x tiles well under the 32 MiB
        # default scoped VMEM (v7x-safe; plenty of slack on v5e/v6e).
        vmem_budget = 16 << 20                       # bytes for x double-buffer
        max_tile = max(128, (vmem_budget // (2 * F * itemsize)) // 128 * 128)
        tile_b = min(4096, max_tile, max(128, _round_up(B, 128)))
    tile_b = max(128, _round_up(tile_b, 128))

    B_pad = _round_up(B, tile_b)

    # Layout plumbing (outside the kernel): transpose x so batch is on lanes,
    # pad batch to a tile multiple, cast the bandwidth-heavy operands to bf16.
    xt = jnp.transpose(x)                                            # (F, B)
    if B_pad != B:
        xt = jnp.pad(xt, ((0, 0), (0, B_pad - B)))
    xt = xt.astype(compute_dtype)
    w1t = jnp.transpose(w1).astype(compute_dtype)                    # (H, F)
    b1c = jnp.reshape(b1, (H, 1)).astype(jnp.float32)                # (H, 1)
    w2c = jnp.reshape(w2, (H, 1)).astype(jnp.float32)                # (H, 1)
    b2s = jnp.reshape(b2, (1, 1)).astype(jnp.float32)                # (1, 1)

    grid = (B_pad // tile_b,)
    out_t = pl.pallas_call(
        classifier_kernel,
        out_shape=jax.ShapeDtypeStruct((1, B_pad), jnp.float32),
        grid=grid,
        in_specs=[
            pl.BlockSpec((F, tile_b), lambda i: (0, i)),   # x tile (batch on lanes)
            pl.BlockSpec((H, F), lambda i: (0, 0)),        # W1^T, resident
            pl.BlockSpec((H, 1), lambda i: (0, 0)),        # b1 column
            pl.BlockSpec((H, 1), lambda i: (0, 0)),        # w2 column
            pl.BlockSpec((1, 1), lambda i: (0, 0)),        # b2 scalar
        ],
        out_specs=pl.BlockSpec((1, tile_b), lambda i: (0, i)),
        compiler_params=pltpu.CompilerParams(
            dimension_semantics=("parallel",)),            # megacore on v7x
    )(xt, w1t, b1c, w2c, b2s)

    return jnp.transpose(out_t[:, :B])                     # (B, 1) f32


def init_params(key, in_features, hidden=10, out=1):
    """Mirrors the PyTorch module: kaiming_uniform_(nonlinearity='relu') for
    weights, PyTorch-default uniform(-1/sqrt(fan_in), ...) for biases."""
    k1, k2, k3, k4 = jax.random.split(key, 4)

    bound1 = math.sqrt(6.0 / in_features)          # gain(sqrt2) * sqrt(3/fan_in)
    w1 = jax.random.uniform(k1, (in_features, hidden), jnp.float32,
                            minval=-bound1, maxval=bound1)
    bb1 = 1.0 / math.sqrt(in_features)
    b1 = jax.random.uniform(k2, (hidden,), jnp.float32, minval=-bb1, maxval=bb1)

    bound2 = math.sqrt(6.0 / hidden)
    w2 = jax.random.uniform(k3, (hidden, out), jnp.float32,
                            minval=-bound2, maxval=bound2)
    bb2 = 1.0 / math.sqrt(hidden)
    b2 = jax.random.uniform(k4, (out,), jnp.float32, minval=-bb2, maxval=bb2)

    return w1, b1, w2, b2


def _reference(x, w1, b1, w2, b2):
    return jax.nn.sigmoid(jnp.maximum(x @ w1 + b1, 0.0) @ w2 + b2)


if __name__ == "__main__":
    key = jax.random.PRNGKey(0)
    kx, kx2, kp = jax.random.split(key, 3)

    batch, in_features = 8, 32
    x = jax.random.normal(kx, (batch, in_features), jnp.float32)
    w1, b1, w2, b2 = init_params(kp, in_features)
    ref = _reference(x, w1, b1, w2, b2)

    # f32 path (exact parity with the PyTorch forward).
    out_f32 = classifier_forward(x, w1, b1, w2, b2, compute_dtype=jnp.float32)
    out_f32 = jax.block_until_ready(out_f32)
    assert out_f32.shape == (batch, 1)
    assert jnp.allclose(out_f32, ref, atol=1e-6), "f32 mismatch vs reference"

    # bf16 fast path (default): halves HBM read traffic, f32 accumulation.
    out_bf16 = classifier_forward(x, w1, b1, w2, b2)
    out_bf16 = jax.block_until_ready(out_bf16)
    assert out_bf16.shape == (batch, 1)
    assert jnp.allclose(out_bf16, ref, atol=2e-2), "bf16 mismatch vs reference"

    # Non-tile-multiple batch to exercise padding + multi-tile grid.
    x2 = jax.random.normal(kx2, (300, in_features), jnp.float32)
    ref2 = _reference(x2, w1, b1, w2, b2)
    out2 = jax.block_until_ready(
        classifier_forward(x2, w1, b1, w2, b2, tile_b=128))
    assert out2.shape == (300, 1)
    assert jnp.allclose(out2, ref2, atol=2e-2), "padded-batch mismatch"

    print("KERNEL_OK")
</pallas_src>

<mosaic_0001>
module attributes {stable_mosaic.version = 11 : i64} {
  func.func @classifier_kernel(%arg0: i32, %arg1: memref<32x128xf32, #tpu.memory_space<vmem>>, %arg2: memref<10x32xf32, #tpu.memory_space<vmem>>, %arg3: memref<10x1xf32, #tpu.memory_space<vmem>>, %arg4: memref<10x1xf32, #tpu.memory_space<vmem>>, %arg5: memref<1x1xf32, #tpu.memory_space<vmem>>, %arg6: memref<1x128xf32, #tpu.memory_space<vmem>>) attributes {dimension_semantics = [#tpu.dimension_semantics<parallel>], iteration_bounds = array<i64: 1>, scalar_prefetch = 0 : i64, scratch_operands = 0 : i64, tpu.core_type = #tpu.core_type<tc>, window_params = [{transform_indices = @transform_0, window_bounds = array<i64: 32, 128>}, {pipeline_mode = #tpu.pipeline_mode<synchronous>, transform_indices = @transform_1, window_bounds = array<i64: 10, 32>}, {pipeline_mode = #tpu.pipeline_mode<synchronous>, transform_indices = @transform_2, window_bounds = array<i64: 10, 1>}, {pipeline_mode = #tpu.pipeline_mode<synchronous>, transform_indices = @transform_3, window_bounds = array<i64: 10, 1>}, {pipeline_mode = #tpu.pipeline_mode<synchronous>, transform_indices = @transform_4, window_bounds = array<i64: 1, 1>}, {transform_indices = @transform_5, window_bounds = array<i64: 1, 128>}]} {
    %c0 = arith.constant 0 : index
    %c0_0 = arith.constant 0 : index
    %0 = vector.load %arg1[%c0, %c0_0] : memref<32x128xf32, #tpu.memory_space<vmem>>, vector<32x128xf32>
    %c0_1 = arith.constant 0 : index
    %c0_2 = arith.constant 0 : index
    %1 = vector.load %arg2[%c0_1, %c0_2] : memref<10x32xf32, #tpu.memory_space<vmem>>, vector<10x32xf32>
    %cst = arith.constant dense<0.000000e+00> : vector<10x128xf32>
    %2 = tpu.matmul %1, %0, %cst {dimension_numbers = #tpu.dot_dimension_numbers<[1], [0], [0], [1], [0, 0, 1, 1], [], []>} : vector<10x32xf32>, vector<32x128xf32>, vector<10x128xf32> -> vector<10x128xf32>
    %c0_3 = arith.constant 0 : index
    %c0_4 = arith.constant 0 : index
    %3 = vector.load %arg3[%c0_3, %c0_4] : memref<10x1xf32, #tpu.memory_space<vmem>>, vector<10x1xf32>
    %4 = vector.broadcast %3 : vector<10x1xf32> to vector<10x128xf32>
    %5 = arith.addf %2, %4 : vector<10x128xf32>
    %cst_5 = arith.constant 0.000000e+00 : f32
    %6 = vector.broadcast %cst_5 : f32 to vector<10x128xf32>
    %7 = arith.maximumf %5, %6 : vector<10x128xf32>
    %c0_6 = arith.constant 0 : index
    %c0_7 = arith.constant 0 : index
    %8 = vector.load %arg4[%c0_6, %c0_7] : memref<10x1xf32, #tpu.memory_space<vmem>>, vector<10x1xf32>
    %9 = vector.broadcast %8 : vector<10x1xf32> to vector<10x128xf32>
    %10 = arith.mulf %7, %9 : vector<10x128xf32>
    %cst_8 = arith.constant dense<0.000000e+00> : vector<128xf32>
    %11 = vector.multi_reduction <add>, %10, %cst_8 [0] : vector<10x128xf32> to vector<128xf32>
    %12 = vector.shape_cast %11 : vector<128xf32> to vector<1x128xf32>
    %c0_9 = arith.constant 0 : index
    %c0_10 = arith.constant 0 : index
    %13 = vector.load %arg5[%c0_9, %c0_10] : memref<1x1xf32, #tpu.memory_space<vmem>>, vector<1x1xf32>
    %14 = vector.broadcast %13 : vector<1x1xf32> to vector<1x128xf32>
    %15 = arith.addf %12, %14 : vector<1x128xf32>
    %16 = arith.negf %15 : vector<1x128xf32>
    %17 = math.exp %16 : vector<1x128xf32>
    %cst_11 = arith.constant 1.000000e+00 : f32
    %18 = vector.broadcast %cst_11 : f32 to vector<1x128xf32>
    %19 = arith.addf %18, %17 : vector<1x128xf32>
    %20 = arith.divf %18, %19 : vector<1x128xf32>
    %c0_12 = arith.constant 0 : index
    %c0_13 = arith.constant 0 : index
    %21 = vector.load %arg6[%c0_12, %c0_13] : memref<1x128xf32, #tpu.memory_space<vmem>>, vector<1x128xf32>
    tpu.vector_store %arg6[%c0_12, %c0_13], %20 {strides = array<i32>} : memref<1x128xf32, #tpu.memory_space<vmem>>, vector<1x128xf32>,
    return
  }
  func.func @transform_0(%arg0: i32) -> (i32, i32) {
    %c0_i32 = arith.constant 0 : i32
    %c0_i32_0 = arith.constant 0 : i32
    return %c0_i32, %arg0 : i32, i32
  }
  func.func @transform_1(%arg0: i32) -> (i32, i32) {
    %c0_i32 = arith.constant 0 : i32
    %c0_i32_0 = arith.constant 0 : i32
    %c0_i32_1 = arith.constant 0 : i32
    return %c0_i32, %c0_i32_0 : i32, i32
  }
  func.func @transform_2(%arg0: i32) -> (i32, i32) {
    %c0_i32 = arith.constant 0 : i32
    %c0_i32_0 = arith.constant 0 : i32
    %c0_i32_1 = arith.constant 0 : i32
    return %c0_i32, %c0_i32_0 : i32, i32
  }
  func.func @transform_3(%arg0: i32) -> (i32, i32) {
    %c0_i32 = arith.constant 0 : i32
    %c0_i32_0 = arith.constant 0 : i32
    %c0_i32_1 = arith.constant 0 : i32
    return %c0_i32, %c0_i32_0 : i32, i32
  }
  func.func @transform_4(%arg0: i32) -> (i32, i32) {
    %c0_i32 = arith.constant 0 : i32
    %c0_i32_0 = arith.constant 0 : i32
    %c0_i32_1 = arith.constant 0 : i32
    return %c0_i32, %c0_i32_0 : i32, i32
  }
  func.func @transform_5(%arg0: i32) -> (i32, i32) {
    %c0_i32 = arith.constant 0 : i32
    %c0_i32_0 = arith.constant 0 : i32
    return %c0_i32, %arg0 : i32, i32
  }
}

</mosaic_0001>

<bundles_post_ra>
// kernel: tpu_custom_call.1
= control target key start
LH: loop header
LB: loop body
LE: loop exit
PB: predicated region body
PF: predicated region fallthrough
CT: control target
= control target key end

     0   :  { %s370_s0 = inlined_call_operand.vmem [shape: f32[32,128], index: 0, kind: input, shape index: {}]   ;;  %s371_s1 = inlined_call_operand.hbm [shape: f32[10,32], index: 1, kind: input, shape index: {}]   ;;  %s372_s2 = inlined_call_operand.vmem [shape: f32[10,1], index: 2, kind: input, shape index: {}]   ;;  %s373_s3 = inlined_call_operand.vmem [shape: f32[10,1], index: 3, kind: input, shape index: {}]   ;;  %s374_s4 = inlined_call_operand.<no memory space> [shape: f32[1,1], index: 4, kind: input, shape index: {}]   ;;  %s375_s5 = inlined_call_operand.hbm [shape: f32[1,128], index: 5, kind: output, shape index: {}]  }
   0x1   :  { %v10_v0 = vstv %s374_s4 }
   0x2   :  { %11 = vst [vmem:[#allocation2] sm:$0x1] %v10_v0 }
   0x3   :  { %12 = vsyncpa [#allocation4], 0 }
   0x4   :  { %13 = vsyncpa [#allocation5], 0  ;;  %s282_s20 = smov [#allocation3]   ;;  %s234_s24 = scalar_lea.hbm %s371_s1, 256 }
   0x5   :  { %s21_s21 = sshll.u32 %s282_s20, 4  ;;  %p235_p0 = scmp.ne.s32.totalorder %s371_s1, %s234_s24  ;;  %s22_s21 = int_to_ptr.vmem [resolvable:$true] %s21_s21 }
   0x6   :  { %p238_p1 = scmp.lt.u32.totalorder %s234_s24, %s371_s1 }
   0x8   :  { %p240_p2 = pnand %p238_p1, %p235_p0 }
   0xa   :  { %243 = shalt.err (!%p240_p2)
}
   0xb   :  { %s244_s4 = scalar_lea.vmem %s22_s21, 256  ;;  %p249_p4 = scmp.lt.s32.totalorder %s22_s21, %s22_s21 }
   0xc   :  { %p245_p3 = scmp.ne.s32.totalorder %s22_s21, %s244_s4  ;;  %p250_p5 = scmp.lt.s32.totalorder %s244_s4, %s244_s4 }
   0xe   :  { %p251_p6 = por %p250_p5, %p249_p4 }
  0x10   :  { %p252_p7 = pnand %p251_p6, %p245_p3 }
  0x12   :  { %255 = shalt.err (!%p252_p7)
}
  0x13   :  { %s283_s29 = smov 128   ;;  %s284_s30 = smov 8  }
  0x14   :  { %27 = dma.hbm_to_vmem [thread:$0]  %s371_s1, 256, %s22_s21, [#allocation4], %s283_s29, %s283_s29, %s284_s30  }
  0x15   :  { %278 = dma.done.wait [#allocation4], 256  }
  0x16   :  { %279 = vsyncadd [#allocation4], 4294967040  ;;  %v285_v1 = vmov 0   ;;  %vm55_vm0 = vcmask 261120   ;;  %v37_v2 = vld [vmem:[%s370_s0] sm:$0xff]  ;;  %v38_v3 = vld [vmem:[%s370_s0 + $0x8] sm:$0xff]  ;;  %v168_v28 = vlaneseq }
  0x17   :  { %228 = vset.pattern.permute.xlu0 %v285_v1  ;;  %229 = vset.pattern.permute.xlu1 %v285_v1  ;;  %v39_v4 = vld [vmem:[%s370_s0 + $0x10] sm:$0xff]  ;;  %v215_v5 = vpack.c.bf16 %v38_v3, %v37_v2  ;;  %v40_v6 = vld [vmem:[%s370_s0 + $0x18] sm:$0xff]  ;;  %v41_v7 = vld [vmem:[#allocation3] sm:$0xff]  ;;  %vm153_vm1 = vcmask 1041408  }
  0x18   :  { %v219_v8 = vpack.c.bf16 %v40_v6, %v39_v4  ;;  %212 = vmatprep.mubr.msk.f32.mxu0 %vm55_vm0, %v41_v7  ;;  %v44_v9 = vld [vmem:[%s372_s2 + $0x8] sm:$0x3]  ;;  %v43_v11 = vld [vmem:[%s372_s2] sm:$0xff]  ;;  %v169_v31 = vshrl.u32 %v168_v28, 7  ;;  %s286_s2 = smov [#allocation6]  }
  0x19   :  { %v140_v10 = vld [vmem:[%s373_s3 + $0x8] sm:$0x3]  ;;  %216 = vmatprep.subr.bf16.mxu0 %v215_v5  ;;  %52 = vperm.xlu0 %228, %v44_v9   ;;  %v139_v12 = vld [vmem:[%s373_s3] sm:$0xff]  ;;  %s186_s3 = sshll.u32 %s286_s2, 4  ;;  %s187_s3 = int_to_ptr.vmem [resolvable:$true] %s186_s3 }
  0x1a   :  { %218 = vmatpush3.bf16.msra.mxu0 %v215_v5  ;;  %148 = vperm.xlu1 %229, %v140_v10   ;;  %v42_v13 = vld [vmem:[#allocation3 + $0x8] sm:$0x3]  ;;  %v162_v14 = vld [vmem:[#allocation2] sm:$0x1]  ;;  %v170_v34 = vsub.s32 0, %v169_v31  ;;  %s256_s22 = scalar_lea.vmem %s187_s3, 16  ;;  %p261_p9 = scmp.lt.s32.totalorder %s187_s3, %s187_s3 }
  0x1b   :  { %220 = vmatprep.subr.bf16.mxu0 %v219_v8  ;;  %p257_p8 = scmp.ne.s32.totalorder %s187_s3, %s256_s22  ;;  %s260_s23 = scalar_lea.vmem %s187_s3, 32 }
  0x1c   :  { %p262_p10 = scmp.lt.s32.totalorder %s260_s23, %s256_s22 }
  0x1d   :  { %47 = vperm.xlu0 %228, %v43_v11  }
  0x1e   :  { %222 = vmatpush3.bf16.msra.mxu0 %v219_v8  ;;  %143 = vperm.xlu1 %229, %v139_v12   ;;  %p263_p11 = por %p262_p10, %p261_p9 }
  0x20   :  { %p264_p12 = pnand %p263_p11, %p257_p8 }
  0x21   :  { %213 = vmatmul.mubr.msk.f32.vlgmr.msra.gmra.mrb[0].mxu0 %vm55_vm0, %v42_v13  ;;  %165 = vperm.xlu0 %228, %v162_v14  }
  0x98   :  { %v53_v15 = vpop.permute.xlu0 %52 }
  0x99   :  { %v149_v16 = vpop.permute.xlu1 %148 }
  0x9c   :  { %v48_v18 = vpop.permute.xlu0 %47 }
  0x9d   :  { %v144_v25 = vpop.permute.xlu1 %143 }
  0xa0   :  { %v166_v36 = vpop.permute.xlu0 %165 }
  0xa1   :  { %v171_v38 = vrot.slane %v166_v36, %v170_v34 }
  0xf4   :  { %v214_v17 = vpop.f32.mrb[0].mxu0 }
  0xf5   :  { %v134_v19 = vadd.f32 %v214_v17, %v53_v15  ;;  %v128_v20 = vpop.f32.mrb[1].mxu0 }
  0xf6   :  { %v129_v21 = vadd.f32 %v128_v20, %v48_v18 }
  0xf7   :  { %v138_v22 = vmax.f32 %v134_v19, 0.0 }
  0xf8   :  { %v137_v23 = vmax.f32 %v129_v21, 0.0 }
  0xf9   :  { %v152_v24 = vmul.f32 %v149_v16, %v138_v22 }
  0xfa   :  { %v151_v26 = vmul.f32 %v144_v25, %v137_v23 }
  0xfb   :  { %v154_v27 = vsel %vm153_vm1, %v152_v24, 0.0 }
  0xfc   :  { %v155_v29 = vadd.f32 %v154_v27, %v151_v26 }
  0xfe   :  { %v156_v30 = vrot.slane %v155_v29, 4 }
 0x100   :  { %v157_v32 = vadd.f32 %v156_v30, %v155_v29 }
 0x102   :  { %v158_v33 = vrot.slane %v157_v32, 2 }
 0x104   :  { %v159_v35 = vadd.f32 %v158_v33, %v157_v32 }
 0x106   :  { %v160_v37 = vrot.slane %v159_v35, 1 }
 0x108   :  { %v161_v39 = vadd.f32 %v160_v37, %v159_v35 }
 0x10a   :  { %v172_v40 = vadd.f32 %v171_v38, %v161_v39 }
 0x10c   :  { %v197_v41 = vmul.f32 -1.442695, %v172_v40 }
 0x10e   :  { %230 = vpow2.f32 %v197_v41 }
 0x118   :  { %v231_v42 = vpop.eup %230 }
 0x119   :  { %v176_v43 = vadd.f32 1.0, %v231_v42 }
 0x11b   :  { %232 = vrcp.f32 %v176_v43 }
 0x125   :  { %v233_v44 = vpop.eup %232 }
 0x126   :  { %179 = vst [vmem:[#allocation6] sm:$0x1] %v233_v44 }
 0x127   :  { %267 = shalt.err (!%p264_p12)
}
 0x128   :  { %s268_s26 = scalar_lea.hbm %s375_s5, 16 }
 0x129   :  { %p269_p13 = scmp.ne.s32.totalorder %s375_s5, %s268_s26  ;;  %p272_p0 = scmp.lt.u32.totalorder %s268_s26, %s375_s5 }
 0x12b   :  { %p274_p1 = pnand %p272_p0, %p269_p13 }
 0x12d   :  { %277 = shalt.err (!%p274_p1)
}
 0x12e   :  { %189 = dma.vmem_to_hbm [thread:$0]  %s187_s3, 16, %s375_s5, [#allocation5]  }
 0x12f   :  { %280 = dma.done.wait [#allocation5], 16  }
 0x130   :  { %281 = vsyncadd [#allocation5], 4294967280 }
 0x131   :  { %193 = vsyncpa [#allocation4], 1 }
 0x132   :  { %194 = vsyncpa [#allocation5], 1 }

</bundles_post_ra>
